<compile_context>
chip_gen: v7x
topology: tpu7x:2x2x1
jax: 0.10.0
libtpu: 0.0.40
codegen_flags: <defaults>
</compile_context>

<pallas_src>
import functools

import jax
import jax.numpy as jnp
import numpy as np
from jax.experimental import pallas as pl
from jax.experimental.pallas import tpu as pltpu

_FP = 128  # lane-padded feature slot width (>= 50)


def _vmem_capacity_bytes():
    """Physical VMEM capacity; conservative (v7x-sized) fallback if unknown."""
    try:
        return int(pltpu.get_tpu_info().vmem_capacity_bytes)
    except Exception:  # pragma: no cover - interpret mode / old runtime
        return 64 << 20


# ---------------------------------------------------------------------------
# One-time parameter preparation (mirrors VAENet.__init__): fused/padded linear
# weights + the constant coordinate planes.  Done OUTSIDE the hot forward path.
# ---------------------------------------------------------------------------
def prepare_vaenet_params(params, H, W, dtype=jnp.float32):
    F = params["w_mu"].shape[0]
    assert F <= _FP, "feature dim must fit in one 128-lane slot"

    # [ W_mu^T | 0 | W_ls^T | 0 ]  -> (F, 2*_FP); bias likewise (1, 2*_FP).
    # Padding columns are exact zeros -> fused padding lanes are exactly 0.
    w_cat = jnp.zeros((F, 2 * _FP), jnp.float32)
    w_cat = w_cat.at[:, :F].set(params["w_mu"].T.astype(jnp.float32))
    w_cat = w_cat.at[:, _FP:_FP + F].set(params["w_ls"].T.astype(jnp.float32))
    b_cat = jnp.zeros((1, 2 * _FP), jnp.float32)
    b_cat = b_cat.at[0, :F].set(params["b_mu"].astype(jnp.float32))
    b_cat = b_cat.at[0, _FP:_FP + F].set(params["b_ls"].astype(jnp.float32))

    # coor planes, flattened to a single lane-dense row (1, 2*H*W): [coor_y|coor_x].
    dh = 2.0 / (H - 1) if H > 1 else 0.0
    dw = 2.0 / (W - 1) if W > 1 else 0.0
    yy = -1.0 + jnp.arange(H, dtype=jnp.float32) * dh
    xx = -1.0 + jnp.arange(W, dtype=jnp.float32) * dw
    coor_y = jnp.broadcast_to(yy[:, None], (H, W)).reshape(-1)
    coor_x = jnp.broadcast_to(xx[None, :], (H, W)).reshape(-1)
    coor = jnp.concatenate([coor_y, coor_x]).reshape(1, 2 * H * W).astype(dtype)

    return {"w_cat": w_cat, "b_cat": b_cat, "coor": coor}


# ---------------------------------------------------------------------------
# Kernel 1: X_seq_cat = cat((X_seq, coor_y, coor_x), channel dim)
# 2-D lane/sublane-dense layout: rows = frames, cols = channels*H*W.
# ---------------------------------------------------------------------------
def _concat_coor_kernel(x_ref, coor_ref, out_ref, *, x_cols):
    tb = out_ref.shape[0]
    coor_cols = out_ref.shape[1] - x_cols
    out_ref[:, :x_cols] = x_ref[...]                       # lane-aligned (x_cols % 128 == 0 here)
    out_ref[:, x_cols:] = jnp.broadcast_to(
        coor_ref[...], (tb, coor_cols)).astype(out_ref.dtype)


def concat_coor(x_seq, coor_flat):
    """x_seq: (N, T, D, H, W), coor_flat: (1, 2*H*W) -> (N, T, D+2, H, W)."""
    N, T, D, H, W = x_seq.shape
    NT, HW = N * T, H * W
    x_cols, out_cols = D * HW, (D + 2) * HW
    xf = x_seq.reshape(NT, x_cols)                         # free reshape; lanes = channel*HW
    coor_flat = coor_flat.astype(x_seq.dtype)

    itemsize = jnp.dtype(x_seq.dtype).itemsize
    row_bytes = (x_cols + out_cols) * itemsize             # in + out bytes per frame (1 copy)

    # Generation-aware block size: double-buffered in+out blocks ~= 1/3 of VMEM.
    cap = _vmem_capacity_bytes()
    budget = cap // 6
    tb = min(NT, max(1, budget // max(row_bytes, 1)))
    if tb < NT:
        tb = max(8, (tb // 8) * 8)                         # sublane-dense blocks
        tb = min(tb, NT)
    grid = pl.cdiv(NT, tb)                                 # remainder-safe (masked tail block)

    vmem_needed = 2 * tb * row_bytes + 2 * HW * itemsize * 2 + (2 << 20)
    vmem_limit = int(min(cap - (8 << 20), max(vmem_needed, 32 << 20)))

    out = pl.pallas_call(
        functools.partial(_concat_coor_kernel, x_cols=x_cols),
        out_shape=jax.ShapeDtypeStruct((NT, out_cols), x_seq.dtype),
        grid=(grid,),
        in_specs=[
            pl.BlockSpec((tb, x_cols), lambda i: (i, 0)),
            pl.BlockSpec((1, 2 * HW), lambda i: (0, 0)),   # coor stays resident
        ],
        out_specs=pl.BlockSpec((tb, out_cols), lambda i: (i, 0)),
        compiler_params=pltpu.CompilerParams(
            dimension_semantics=("parallel",),
            vmem_limit_bytes=vmem_limit),
    )(xf, coor_flat)
    # Row layout [x(D,HW) | coor_y(HW) | coor_x(HW)] == channel concat -> free reshape.
    return out.reshape(N, T, D + 2, H, W)


# ---------------------------------------------------------------------------
# Kernel 2: fused _sample_latent.
#   fused = h @ [W_mu^T | W_ls^T]_pad + [b_mu | b_ls]_pad   (one MXU pass)
#   z     = fused[:, 0:128] + exp(fused[:, 128:256]) * eps_pad
#   out   = one (bm, 2*128) tile: z slot @ lanes [0:128), sigma slot @ [128:256)
#   Padding lanes are deterministic (z pad = 0, sigma pad = 1) -> nothing
#   uninitialised is written back; full-width unmasked stores only.
# ---------------------------------------------------------------------------
def _sample_latent_kernel(h_ref, w_ref, b_ref, eps_ref, zs_ref):
    fused = jnp.dot(h_ref[...], w_ref[...],
                    preferred_element_type=jnp.float32) + b_ref[...]
    mu_slab = fused[:, :_FP]               # lanes F..127 exactly 0 (zero-padded W, b)
    sigma_slab = jnp.exp(fused[:, _FP:])   # lanes F..127 exactly 1
    z_slab = mu_slab + sigma_slab * eps_ref[...]  # eps pad lanes 0 -> z pad lanes 0
    zs_ref[:, :_FP] = z_slab
    zs_ref[:, _FP:] = sigma_slab


def _pick_block_m(M, row_bytes, vmem_budget):
    """Largest MXU-friendly row block that fits the (double-buffered) budget."""
    max_rows = max(128, vmem_budget // (2 * max(row_bytes, 1)))
    for bm in (1024, 512, 256, 128):
        if M >= bm and bm <= max_rows:
            return bm
    return M  # tiny M (< 128): single block


def sample_latent_fused(h_enc, w_cat, b_cat, eps, denom):
    """h_enc, eps: (M, F); w_cat: (F, 2*128); b_cat: (1, 2*128) (pre-fused)."""
    M, F = h_enc.shape
    # Lane-pad eps once (layout plumbing) so every in-kernel store is a full slot.
    eps_p = jnp.zeros((M, _FP), jnp.float32).at[:, :F].set(eps.astype(jnp.float32))

    row_bytes = (F + _FP + 2 * _FP) * 4      # h + eps + zs per row (f32, in VMEM)
    bm = _pick_block_m(M, row_bytes, _vmem_capacity_bytes() // 4)
    grid = pl.cdiv(M, bm)                    # remainder-safe: rows are independent,
                                             # OOB output rows masked on writeback.
    zs = pl.pallas_call(
        _sample_latent_kernel,
        out_shape=jax.ShapeDtypeStruct((M, 2 * _FP), jnp.float32),
        grid=(grid,),
        in_specs=[
            pl.BlockSpec((bm, F), lambda i: (i, 0)),
            pl.BlockSpec((F, 2 * _FP), lambda i: (0, 0)),   # weights resident
            pl.BlockSpec((1, 2 * _FP), lambda i: (0, 0)),
            pl.BlockSpec((bm, _FP), lambda i: (i, 0)),
        ],
        out_specs=pl.BlockSpec((bm, 2 * _FP), lambda i: (i, 0)),
        # No carried accumulator -> fully parallel (both TCs on v7x).
        compiler_params=pltpu.CompilerParams(dimension_semantics=("parallel",)),
    )(h_enc, w_cat, b_cat, eps_p)

    z = zs[:, :F]
    z_sigma = zs[:, _FP:_FP + F]
    z_mean = z - z_sigma * eps               # exact to one f32 rounding; saves a 3rd slot
    # loss.sum()/(N*T): z is read for the slices anyway, so this reduce fuses in XLA
    # and keeps the kernel's row axis parallel (no serialised accumulator).
    loss = jnp.sum(z) / float(denom)
    return z, z_mean, z_sigma, loss


# ---------------------------------------------------------------------------
# Forward glue reproducing the VAENet.forward structure defined in the module.
# ---------------------------------------------------------------------------
def vaenet_forward(X_seq, h_enc, prepared, eps, N, T):
    # X_seq_cat = cat((X_seq, self.coor), 2)
    X_seq_cat = concat_coor(X_seq, prepared["coor"])

    # TODO(synk): FeatureExtractor / smd.CheckBP are undefined submodules; `h_enc`
    # stands in for their (.., 50) output.  X_seq_cat is returned so the concat
    # kernel is never DCE'd; ideally it would fuse into FeatureExtractor's 1st conv.

    # C_o_seq = self._sample_latent(C_o_seq); loss = loss.sum() / (N*T)
    # TODO(synk): TrackerArray / Renderer / LossCalculator are undefined; the
    # final reduction is applied to the sampled latent as a stand-in.
    z, z_mean, z_sigma, loss = sample_latent_fused(
        h_enc, prepared["w_cat"], prepared["b_cat"], eps, denom=N * T)

    return loss, z, z_mean, z_sigma, X_seq_cat


if __name__ == "__main__":
    # Small synthetic shapes consistent with the module:
    # N batch, T timesteps, D image channels, H x W frames, latent feature dim = 50.
    N, T, D, H, W = 2, 4, 1, 16, 16
    F = 50

    key = jax.random.PRNGKey(0)
    k1, k2, k3, k4, k5, k6, k7 = jax.random.split(key, 7)

    X_seq = jax.random.uniform(k1, (N, T, D, H, W), jnp.float32)
    params = {
        "w_mu": jax.random.normal(k2, (F, F), jnp.float32) * 0.1,   # nn.Linear(50,50).weight
        "b_mu": jax.random.normal(k3, (F,), jnp.float32) * 0.1,     # nn.Linear(50,50).bias
        "w_ls": jax.random.normal(k4, (F, F), jnp.float32) * 0.1,
        "b_ls": jax.random.normal(k5, (F,), jnp.float32) * 0.1,
    }
    h_enc = jax.random.normal(k6, (N * T, F), jnp.float32)   # stand-in for C_o_seq
    eps = jax.random.normal(k7, (N * T, F), jnp.float32)     # std_z (deterministic here)

    # One-time setup (mirrors __init__): fused/padded linear params + coor planes.
    prepared = prepare_vaenet_params(params, H, W, X_seq.dtype)

    # Run the Pallas kernels.
    loss, z, z_mean, z_sigma, X_cat = vaenet_forward(X_seq, h_enc, prepared, eps, N, T)
    jax.block_until_ready((loss, z, z_mean, z_sigma, X_cat))

    # --- reference checks (plain numpy) ---
    yy = -1.0 + np.arange(H, dtype=np.float32) * (2.0 / (H - 1))
    xx = -1.0 + np.arange(W, dtype=np.float32) * (2.0 / (W - 1))
    coor_y = np.broadcast_to(yy[None, None, None, :, None], (N, T, 1, H, W))
    coor_x = np.broadcast_to(xx[None, None, None, None, :], (N, T, 1, H, W))
    X_cat_ref = np.concatenate([np.asarray(X_seq), coor_y, coor_x], axis=2)
    assert np.allclose(np.asarray(X_cat), X_cat_ref, atol=1e-5)

    mu_ref = np.asarray(h_enc) @ np.asarray(params["w_mu"]).T + np.asarray(params["b_mu"])
    sg_ref = np.exp(np.asarray(h_enc) @ np.asarray(params["w_ls"]).T + np.asarray(params["b_ls"]))
    z_ref = mu_ref + sg_ref * np.asarray(eps)
    assert np.allclose(np.asarray(z_mean), mu_ref, atol=1e-4)
    assert np.allclose(np.asarray(z_sigma), sg_ref, atol=1e-4)
    assert np.allclose(np.asarray(z), z_ref, atol=1e-4)
    assert np.allclose(float(loss), z_ref.sum() / (N * T), rtol=1e-4)

    print("KERNEL_OK")
</pallas_src>

<mosaic_0001>
module attributes {stable_mosaic.version = 11 : i64} {
  func.func @_concat_coor_kernel(%arg0: i32, %arg1: memref<8x256xf32, #tpu.memory_space<vmem>>, %arg2: memref<1x512xf32, #tpu.memory_space<vmem>>, %arg3: memref<8x768xf32, #tpu.memory_space<vmem>>) attributes {dimension_semantics = [#tpu.dimension_semantics<parallel>], iteration_bounds = array<i64: 1>, scalar_prefetch = 0 : i64, scratch_operands = 0 : i64, tpu.core_type = #tpu.core_type<tc>, window_params = [{transform_indices = @transform_0, window_bounds = array<i64: 8, 256>}, {pipeline_mode = #tpu.pipeline_mode<synchronous>, transform_indices = @transform_1, window_bounds = array<i64: 1, 512>}, {transform_indices = @transform_2, window_bounds = array<i64: 8, 768>}]} {
    %c0 = arith.constant 0 : index
    %c0_0 = arith.constant 0 : index
    %0 = vector.load %arg1[%c0, %c0_0] : memref<8x256xf32, #tpu.memory_space<vmem>>, vector<8x256xf32>
    %c0_1 = arith.constant 0 : index
    %c0_2 = arith.constant 0 : index
    %1 = vector.load %arg3[%c0_1, %c0_2] : memref<8x768xf32, #tpu.memory_space<vmem>>, vector<8x256xf32>
    tpu.vector_store %arg3[%c0_1, %c0_2], %0 {strides = array<i32>} : memref<8x768xf32, #tpu.memory_space<vmem>>, vector<8x256xf32>,
    %c0_3 = arith.constant 0 : index
    %c0_4 = arith.constant 0 : index
    %2 = vector.load %arg2[%c0_3, %c0_4] : memref<1x512xf32, #tpu.memory_space<vmem>>, vector<1x512xf32>
    %3 = vector.shape_cast %2 : vector<1x512xf32> to vector<1x512xf32>
    %4 = vector.broadcast %3 : vector<1x512xf32> to vector<8x512xf32>
    %c0_5 = arith.constant 0 : index
    %c256 = arith.constant 256 : index
    %5 = vector.load %arg3[%c0_5, %c256] : memref<8x768xf32, #tpu.memory_space<vmem>>, vector<8x512xf32>
    tpu.vector_store %arg3[%c0_5, %c256], %4 {strides = array<i32>} : memref<8x768xf32, #tpu.memory_space<vmem>>, vector<8x512xf32>,
    return
  }
  func.func @transform_0(%arg0: i32) -> (i32, i32) {
    %c0_i32 = arith.constant 0 : i32
    %c0_i32_0 = arith.constant 0 : i32
    return %arg0, %c0_i32 : i32, i32
  }
  func.func @transform_1(%arg0: i32) -> (i32, i32) {
    %c0_i32 = arith.constant 0 : i32
    %c0_i32_0 = arith.constant 0 : i32
    %c0_i32_1 = arith.constant 0 : i32
    return %c0_i32, %c0_i32_0 : i32, i32
  }
  func.func @transform_2(%arg0: i32) -> (i32, i32) {
    %c0_i32 = arith.constant 0 : i32
    %c0_i32_0 = arith.constant 0 : i32
    return %arg0, %c0_i32 : i32, i32
  }
}

</mosaic_0001>

<bundles_post_ra>
// kernel: tpu_custom_call.1
= control target key start
LH: loop header
LB: loop body
LE: loop exit
PB: predicated region body
PF: predicated region fallthrough
CT: control target
= control target key end

     0   :  { %7 = vsyncpa [#allocation3], 0  ;;  %s211_s0 = inlined_call_operand.hbm [shape: f32[8,256], index: 0, kind: input, shape index: {}]   ;;  %s212_s1 = inlined_call_operand.hbm [shape: f32[1,512], index: 1, kind: input, shape index: {}]   ;;  %s213_s2 = inlined_call_operand.hbm [shape: f32[8,768], index: 2, kind: output, shape index: {}]  }
   0x1   :  { %8 = vsyncpa [#allocation6], 0 }
   0x2   :  { %9 = vsyncpa [#allocation4], 0  ;;  %s157_s9 = smov [#allocation2]   ;;  %s158_s11 = smov [#allocation5]  }
   0x3   :  { %s16_s10 = sshll.u32 %s157_s9, 4  ;;  %s26_s12 = sshll.u32 %s158_s11, 4  ;;  %s17_s10 = int_to_ptr.vmem [resolvable:$true] %s16_s10  ;;  %s27_s12 = int_to_ptr.vmem [resolvable:$true] %s26_s12 }
   0x4   :  { %s85_s15 = scalar_lea.hbm %s211_s0, 256 }
   0x5   :  { %p86_p0 = scmp.ne.s32.totalorder %s211_s0, %s85_s15  ;;  %p89_p1 = scmp.lt.u32.totalorder %s85_s15, %s211_s0 }
   0x7   :  { %p91_p2 = pnand %p89_p1, %p86_p0 }
   0x9   :  { %94 = shalt.err (!%p91_p2)
}
   0xa   :  { %s95_s20 = scalar_lea.vmem %s17_s10, 256  ;;  %p100_p4 = scmp.lt.s32.totalorder %s17_s10, %s17_s10 }
   0xb   :  { %p96_p3 = scmp.ne.s32.totalorder %s17_s10, %s95_s20  ;;  %p101_p5 = scmp.lt.s32.totalorder %s95_s20, %s95_s20 }
   0xd   :  { %p102_p6 = por %p101_p5, %p100_p4 }
   0xf   :  { %p103_p7 = pnand %p102_p6, %p96_p3 }
  0x11   :  { %106 = shalt.err (!%p103_p7)
}
  0x12   :  { %19 = dma.hbm_to_vmem [thread:$0]  %s211_s0, 256, %s17_s10, [#allocation3]  }
  0x13   :  { %s107_s25 = scalar_lea.hbm %s212_s1, 64 }
  0x14   :  { %p108_p8 = scmp.ne.s32.totalorder %s212_s1, %s107_s25  ;;  %p111_p9 = scmp.lt.u32.totalorder %s107_s25, %s212_s1 }
  0x16   :  { %p113_p10 = pnand %p111_p9, %p108_p8 }
  0x18   :  { %116 = shalt.err (!%p113_p10)
}
  0x19   :  { %s117_s30 = scalar_lea.vmem %s27_s12, 64  ;;  %p122_p12 = scmp.lt.s32.totalorder %s27_s12, %s27_s12 }
  0x1a   :  { %p118_p11 = scmp.ne.s32.totalorder %s27_s12, %s117_s30  ;;  %p123_p13 = scmp.lt.s32.totalorder %s117_s30, %s117_s30 }
  0x1c   :  { %p124_p0 = por %p123_p13, %p122_p12 }
  0x1e   :  { %p125_p1 = pnand %p124_p0, %p118_p11 }
  0x20   :  { %128 = shalt.err (!%p125_p1)
}
  0x21   :  { %29 = dma.hbm_to_vmem [thread:$0]  %s212_s1, 64, %s27_s12, [#allocation6]  }
  0x22   :  { %151 = dma.done.wait [#allocation3], 256  }
  0x23   :  { %152 = vsyncadd [#allocation3], 4294967040 }
  0x24   :  { %153 = dma.done.wait [#allocation6], 64  }
  0x25   :  { %154 = vsyncadd [#allocation6], 4294967232  ;;  %v42_v0 = vlaneseq  ;;  %s159_s4 = smov [#allocation7]   ;;  %v36_v6 = vld [vmem:[#allocation2] sm:$0xff]  ;;  %v37_v7 = vld [vmem:[#allocation2 + $0x8] sm:$0xff] }
  0x26   :  { %s72_s5 = sshll.u32 %s159_s4, 4  ;;  %v40_v8 = vld [vmem:[#allocation5] sm:$0xf]  ;;  %38 = vst [vmem:[#allocation7] sm:$0xff] %v36_v6  ;;  %39 = vst [vmem:[#allocation7 + $0x8] sm:$0xff] %v37_v7  ;;  %s73_s5 = int_to_ptr.vmem [resolvable:$true] %s72_s5 }
  0x27   :  { %v43_v1 = vshrl.u32 %v42_v0, 7  ;;  %s129_s1 = scalar_lea.vmem %s73_s5, 768  ;;  %p134_p3 = scmp.lt.s32.totalorder %s73_s5, %s73_s5 }
  0x28   :  { %p130_p2 = scmp.ne.s32.totalorder %s73_s5, %s129_s1  ;;  %p135_p4 = scmp.lt.s32.totalorder %s129_s1, %s129_s1 }
  0x29   :  { %v44_v2 = vsub.s32 0, %v43_v1  ;;  %v48_v3 = vsub.s32 1, %v43_v1  ;;  %v52_v4 = vsub.s32 2, %v43_v1  ;;  %v56_v5 = vsub.s32 3, %v43_v1 }
  0x2a   :  { %p136_p5 = por %p135_p4, %p134_p3 }
  0x2b   :  { %v45_v9 = vrot.slane %v40_v8, %v44_v2  ;;  %v49_v10 = vrot.slane %v40_v8, %v48_v3  ;;  %v53_v11 = vrot.slane %v40_v8, %v52_v4  ;;  %v57_v12 = vrot.slane %v40_v8, %v56_v5 }
  0x2c   :  { %p137_p6 = pnand %p136_p5, %p130_p2 }
  0x2d   :  { %62 = vst [vmem:[#allocation7 + $0x10] sm:$0xff] %v45_v9  ;;  %63 = vst [vmem:[#allocation7 + $0x18] sm:$0xff] %v49_v10 }
  0x2e   :  { %64 = vst [vmem:[#allocation7 + $0x20] sm:$0xff] %v53_v11  ;;  %65 = vst [vmem:[#allocation7 + $0x28] sm:$0xff] %v57_v12 }
  0x2f   :  { %140 = shalt.err (!%p137_p6)
}
  0x30   :  { %s141_s8 = scalar_lea.hbm %s213_s2, 768 }
  0x31   :  { %p142_p7 = scmp.ne.s32.totalorder %s213_s2, %s141_s8  ;;  %p145_p8 = scmp.lt.u32.totalorder %s141_s8, %s213_s2 }
  0x33   :  { %p147_p9 = pnand %p145_p8, %p142_p7 }
  0x35   :  { %150 = shalt.err (!%p147_p9)
}
  0x36   :  { %75 = dma.vmem_to_hbm [thread:$0]  %s73_s5, 768, %s213_s2, [#allocation4]  }
  0x37   :  { %155 = dma.done.wait [#allocation4], 768  }
  0x38   :  { %156 = vsyncadd [#allocation4], 4294966528 }
  0x39   :  { %79 = vsyncpa [#allocation3], 1 }
  0x3a   :  { %80 = vsyncpa [#allocation6], 1 }
  0x3b   :  { %81 = vsyncpa [#allocation4], 1 }

</bundles_post_ra>
